<compile_context>
chip_gen: v7x
topology: tpu7x:2x2x1
jax: 0.10.0
libtpu: 0.0.40
codegen_flags: <defaults>
</compile_context>

<pallas_src>
import functools

import numpy as np
import jax
import jax.numpy as jnp
from jax.experimental import pallas as pl
from jax.experimental.pallas import tpu as pltpu


# ----------------------------------------------------------------------------------
# small helpers
# ----------------------------------------------------------------------------------
def _const_spec(shape):
    """Full-array block that is identical for every grid step."""
    n = len(shape)
    return pl.BlockSpec(shape, lambda *_: (0,) * n)


# ----------------------------------------------------------------------------------
# Kernel 1: separable spatial transform   out[n] = A @ X[n] @ B^T
#   (a) bilinear Resize + CenterCrop of the input images
#   (b) bilinear-upsample + Gaussian-blur of the anomaly map
# O(HW*(H+W)) instead of the O((HW)^2) Kronecker-product formulation.
# ----------------------------------------------------------------------------------
def _sep2d_kernel(x_ref, a_ref, bt_ref, o_ref):
    t = jnp.dot(a_ref[...], x_ref[0], preferred_element_type=jnp.float32)
    o_ref[0] = jnp.dot(t, bt_ref[...], preferred_element_type=jnp.float32)


def pallas_separable_transform(x3, a, bt):
    n, h, w = x3.shape
    ho, _ = a.shape
    _, wo = bt.shape
    return pl.pallas_call(
        _sep2d_kernel,
        out_shape=jax.ShapeDtypeStruct((n, ho, wo), jnp.float32),
        grid=(n,),
        in_specs=[pl.BlockSpec((1, h, w), lambda i: (i, 0, 0)),
                  pl.BlockSpec((ho, h), lambda i: (0, 0)),
                  pl.BlockSpec((w, wo), lambda i: (0, 0))],
        out_specs=pl.BlockSpec((1, ho, wo), lambda i: (i, 0, 0)),
        compiler_params=pltpu.CompilerParams(dimension_semantics=("parallel",)),
    )(x3.astype(jnp.float32), a.astype(jnp.float32), bt.astype(jnp.float32))


# ----------------------------------------------------------------------------------
# Kernel 2: fused conv3x3(pad=1) + bias + ReLU [+ AvgPool2d(3,1,1)] per layer,
#           with optional ImageNet normalization folded into the prologue.
# The 3x3 halo is built in a VMEM scratch (no XLA jnp.pad / im2col round trips);
# the 9 taps are read straight from the scratch (sublane-strided for stride-2 layers)
# and accumulated as bf16 MXU matmuls with an f32 accumulator.
# Gridded over the batch ("parallel") so v7x can use both TensorCores.
# ----------------------------------------------------------------------------------
def _conv_pool_kernel(x_ref, w_ref, b_ref, scale_ref, shift_ref, *rest, stride, pool):
    if pool:
        conv_ref, pool_ref, xpad_ref, cpad_ref = rest
    else:
        conv_ref, xpad_ref = rest
    bsz, h, w, cin = x_ref.shape          # bsz == 1 (one image per grid step)
    _, ho, wo, cout = conv_ref.shape

    # fused Normalize() prologue (scale=1, shift=0 for non-stem layers)
    xn = x_ref[...] * scale_ref[...] + shift_ref[...]

    # zero-padded halo kept entirely in VMEM scratch
    xpad_ref[...] = jnp.zeros(xpad_ref.shape, jnp.float32)
    xpad_ref[:, 1:h + 1, 1:w + 1, :] = xn

    # in-kernel im2col: loop the 9 taps, accumulate bf16 matmuls into an f32 acc
    npix = bsz * ho * wo
    acc = jnp.zeros((npix, cout), jnp.float32)
    for t in range(9):
        dy, dx = t // 3, t % 3
        if stride == 1:
            tap = xpad_ref[:, pl.ds(dy, ho), pl.ds(dx, wo), :]
        else:
            tap = xpad_ref[:, pl.ds(dy, ho, stride=stride),
                           pl.ds(dx, wo, stride=stride), :]
        tap2 = tap.reshape(npix, cin).astype(jnp.bfloat16)
        acc = acc + jnp.dot(tap2, w_ref[t], preferred_element_type=jnp.float32)

    y = jnp.maximum(acc + b_ref[...], 0.0)               # bias + ReLU
    y4 = y.reshape(bsz, ho, wo, cout)
    conv_ref[...] = y4

    if pool:
        # fused AvgPool2d(3, stride=1, padding=1), count_include_pad=True
        cpad_ref[...] = jnp.zeros(cpad_ref.shape, jnp.float32)
        cpad_ref[:, 1:ho + 1, 1:wo + 1, :] = y4
        pp = cpad_ref[...]
        pacc = jnp.zeros((bsz, ho, wo, cout), jnp.float32)
        for dy in range(3):
            for dx in range(3):
                pacc = pacc + pp[:, dy:dy + ho, dx:dx + wo, :]
        pool_ref[...] = pacc * (1.0 / 9.0)


def conv3x3_relu_pool(x, w, bias, *, stride, pool, mean=None, std=None):
    b, h, wd, cin = x.shape
    cout = w.shape[-1]
    ho = (h - 1) // stride + 1
    wo = (wd - 1) // stride + 1

    wt = jnp.asarray(w, jnp.float32).reshape(9, cin, cout).astype(jnp.bfloat16)
    bias2 = jnp.asarray(bias, jnp.float32).reshape(1, cout)
    if mean is not None:
        scale = (1.0 / std).reshape(1, 1, 1, cin).astype(jnp.float32)
        shift = (-mean / std).reshape(1, 1, 1, cin).astype(jnp.float32)
    else:
        scale = jnp.ones((1, 1, 1, cin), jnp.float32)
        shift = jnp.zeros((1, 1, 1, cin), jnp.float32)

    in_specs = [pl.BlockSpec((1, h, wd, cin), lambda i: (i, 0, 0, 0)),
                _const_spec((9, cin, cout)),
                _const_spec((1, cout)),
                _const_spec((1, 1, 1, cin)),
                _const_spec((1, 1, 1, cin))]
    scratch = [pltpu.VMEM((1, h + 2, wd + 2, cin), jnp.float32)]
    out_block = pl.BlockSpec((1, ho, wo, cout), lambda i: (i, 0, 0, 0))
    if pool:
        out_shape = (jax.ShapeDtypeStruct((b, ho, wo, cout), jnp.float32),
                     jax.ShapeDtypeStruct((b, ho, wo, cout), jnp.float32))
        out_specs = (out_block, out_block)
        scratch.append(pltpu.VMEM((1, ho + 2, wo + 2, cout), jnp.float32))
    else:
        out_shape = jax.ShapeDtypeStruct((b, ho, wo, cout), jnp.float32)
        out_specs = out_block

    out = pl.pallas_call(
        functools.partial(_conv_pool_kernel, stride=stride, pool=pool),
        out_shape=out_shape,
        grid=(b,),
        in_specs=in_specs,
        out_specs=out_specs,
        scratch_shapes=scratch,
        compiler_params=pltpu.CompilerParams(dimension_semantics=("parallel",)),
    )(x.astype(jnp.float32), wt, bias2, scale, shift)
    if pool:
        return out[0], out[1]
    return out, None


# ----------------------------------------------------------------------------------
# Kernel 3: patch NN search against the memory bank.
# Only (min, argmin) are written -- no full (N, M) distance matrix writeback.
# Inputs are zero-padded to 128 channels / 128 bank rows so the MXU K/N dims and all
# loads/stores are lane-dense; padded bank rows are masked out of the min/argmin.
# Tiled over patch rows with a "parallel" grid so v7x can shard across both TCs.
# TODO(synk): at production scale (M ~ 10k+ coreset, C = 1536) also tile M with a
# running min/argmin in VMEM scratch and halve the tile budget on v7x (64 MiB VMEM).
# ----------------------------------------------------------------------------------
def _nn_kernel(x_ref, m_ref, min_ref, arg_ref, *, m_valid):
    x = x_ref[...]                                      # (TN, Cpad) f32
    m = m_ref[...]                                      # (Mpad, Cpad) f32
    # squared norms + sqrt in f32, cross term on the MXU in bf16 (f32 accumulate)
    x2 = jnp.sum(x * x, axis=1, keepdims=True)
    m2 = jnp.sum(m * m, axis=1).reshape(1, m.shape[0])
    dot = jax.lax.dot_general(x.astype(jnp.bfloat16), m.astype(jnp.bfloat16),
                              (((1,), (1,)), ((), ())),
                              preferred_element_type=jnp.float32)
    d = jnp.sqrt(jnp.maximum(x2 - 2.0 * dot + m2, 0.0))
    col = jax.lax.broadcasted_iota(jnp.int32, d.shape, 1)
    d = jnp.where(col < m_valid, d, 1e30)               # mask padded bank rows
    dmin = jnp.min(d, axis=1, keepdims=True)
    min_ref[...] = dmin
    arg_ref[...] = jnp.min(jnp.where(d == dmin, col, m.shape[0]),
                           axis=1, keepdims=True)


def pallas_nn_search(x_pad, mem_pad, m_valid, n_tile):
    n, cpad = x_pad.shape
    mpad, _ = mem_pad.shape
    assert n % n_tile == 0
    return pl.pallas_call(
        functools.partial(_nn_kernel, m_valid=m_valid),
        out_shape=(jax.ShapeDtypeStruct((n, 1), jnp.float32),
                   jax.ShapeDtypeStruct((n, 1), jnp.int32)),
        grid=(n // n_tile,),
        in_specs=[pl.BlockSpec((n_tile, cpad), lambda i: (i, 0)),
                  pl.BlockSpec((mpad, cpad), lambda i: (0, 0))],
        out_specs=(pl.BlockSpec((n_tile, 1), lambda i: (i, 0)),
                   pl.BlockSpec((n_tile, 1), lambda i: (i, 0))),
        compiler_params=pltpu.CompilerParams(dimension_semantics=("parallel",)),
    )(x_pad.astype(jnp.float32), mem_pad.astype(jnp.float32))


# ----------------------------------------------------------------------------------
# host-side interpolation / blur matrices (tiny constants)
# ----------------------------------------------------------------------------------
def _bilinear_matrix(out_size, in_size):
    # F.interpolate(mode="bilinear", align_corners=False)
    mat = np.zeros((out_size, in_size), np.float32)
    scale = in_size / out_size
    for i in range(out_size):
        src = (i + 0.5) * scale - 0.5
        i0 = int(np.floor(src))
        w1 = src - i0
        a = min(max(i0, 0), in_size - 1)
        b = min(max(i0 + 1, 0), in_size - 1)
        mat[i, a] += 1.0 - w1
        mat[i, b] += w1
    return mat


def _gaussian_blur_matrix(size, sigma):
    # anomalib GaussianBlur2d: ks = 2 * int(4*sigma + 0.5) + 1, reflect border
    ks = 2 * int(4.0 * sigma + 0.5) + 1
    half = ks // 2
    assert half <= size - 1, "blur kernel too large for map (scale sigma down)"
    xs = np.arange(ks, dtype=np.float64) - half
    g = np.exp(-(xs ** 2) / (2.0 * sigma ** 2))
    g = (g / g.sum()).astype(np.float32)
    mat = np.zeros((size, size), np.float32)
    for i in range(size):
        for k in range(ks):
            j = i + k - half
            if j < 0:
                j = -j
            if j >= size:
                j = 2 * (size - 1) - j
            mat[i, j] += g[k]
    return mat


# ----------------------------------------------------------------------------------
# Patchcore forward
# ----------------------------------------------------------------------------------
IMAGENET_MEAN = jnp.array([0.485, 0.456, 0.406], jnp.float32)
IMAGENET_STD = jnp.array([0.229, 0.224, 0.225], jnp.float32)

RESIZE = 16        # scaled-down analogue of Resize((256, 256))
CROP = 14          # scaled-down analogue of CenterCrop((224, 224))
BLUR_SIGMA = 1.0   # scaled-down analogue of sigma=4 (for 224x224 maps)
LAYER_CH = (8, 16, 32, 64)     # stem, "layer1", "layer2", "layer3"
EMB_DIM = 16 + 32 + 64         # 112
MEM_BANK = 64
NUM_NEIGHBORS = 9
C_PAD = 128                    # lane-padded embedding width for the NN kernel
M_PAD = 128                    # lane-padded memory-bank rows for the NN kernel
N_TILE = 64                    # patch-row tile for the NN kernel grid


def init_params(key):
    cins = (3,) + LAYER_CH[:-1]
    params = []
    for cin, cout in zip(cins, LAYER_CH):
        key, k1, k2 = jax.random.split(key, 3)
        w = jax.random.normal(k1, (3, 3, cin, cout), jnp.float32) / np.sqrt(9.0 * cin)
        b = 0.01 * jax.random.normal(k2, (cout,), jnp.float32)
        params.append((w, b))
    key, km = jax.random.split(key)
    # TODO(synk): real Patchcore builds the memory bank via coreset subsampling of
    # training features; here it is a deterministic synthetic bank.
    memory_bank = jax.random.normal(km, (MEM_BANK, EMB_DIM), jnp.float32)
    return params, memory_bank


def patchcore_forward(x_nchw, params, memory_bank, num_neighbors=NUM_NEIGHBORS):
    b, c, h_in, w_in = x_nchw.shape
    x_nchw = x_nchw.astype(jnp.float32)

    # ---- transform: Resize + CenterCrop as separable bilinear matmuls --------------
    # TODO(synk): torchvision v2.Resize uses antialiased bilinear; plain bilinear here.
    off = (RESIZE - CROP) // 2
    rh = _bilinear_matrix(RESIZE, h_in)[off:off + CROP]          # (CROP, Hin)
    rw = _bilinear_matrix(RESIZE, w_in)[off:off + CROP]          # (CROP, Win)
    xc = pallas_separable_transform(
        x_nchw.reshape(b * c, h_in, w_in), jnp.asarray(rh), jnp.asarray(rw.T))
    x_nhwc = jnp.transpose(xc.reshape(b, c, CROP, CROP), (0, 2, 3, 1))  # NCHW -> NHWC

    # ---- tiny stand-in backbone (wide_resnet50_2 layer1/2/3 analogue) --------------
    # Normalize() is fused into the stem kernel prologue; AvgPool2d(3,1,1) is fused
    # into each feature layer's kernel epilogue.
    (w0, b0), (w1, b1), (w2, b2), (w3, b3) = params
    stem, _ = conv3x3_relu_pool(x_nhwc, w0, b0, stride=2, pool=False,
                                mean=IMAGENET_MEAN, std=IMAGENET_STD)  # (B,7,7, 8)
    f1, p1 = conv3x3_relu_pool(stem, w1, b1, stride=1, pool=True)      # (B,7,7,16)
    f2, p2 = conv3x3_relu_pool(f1, w2, b2, stride=2, pool=True)        # (B,4,4,32)
    _, p3 = conv3x3_relu_pool(f2, w3, b3, stride=2, pool=True)         # (B,2,2,64)

    # ---- generate_embedding: nearest-upsample to layer1 size, concat channels ------
    hh, ww = p1.shape[1], p1.shape[2]

    def upsample_nearest(f):
        fh, fw = f.shape[1], f.shape[2]
        ih = (jnp.arange(hh) * fh // hh).astype(jnp.int32)
        iw = (jnp.arange(ww) * fw // ww).astype(jnp.int32)
        return f[:, ih][:, :, iw]

    emb = jnp.concatenate([p1, upsample_nearest(p2), upsample_nearest(p3)], axis=-1)
    emb_flat = emb.reshape(b * hh * ww, EMB_DIM)                  # reshape_embedding

    # ---- patch-level nearest neighbor search against the memory bank ---------------
    n_patches = b * hh * ww
    n_pad = ((n_patches + N_TILE - 1) // N_TILE) * N_TILE
    emb_pad = jnp.pad(emb_flat, ((0, n_pad - n_patches), (0, C_PAD - EMB_DIM)))
    mem_pad = jnp.pad(memory_bank, ((0, M_PAD - memory_bank.shape[0]),
                                    (0, C_PAD - EMB_DIM)))
    dmin, amin = pallas_nn_search(emb_pad, mem_pad,
                                  m_valid=memory_bank.shape[0], n_tile=N_TILE)
    patch_scores = dmin[:n_patches, 0].reshape(b, hh * ww)
    locations = amin[:n_patches, 0].reshape(b, hh * ww)

    # ---- image-level anomaly score (num_neighbors re-weighting), tiny -> plain jnp --
    n_mem = memory_bank.shape[0]
    bidx = jnp.arange(b)
    max_patches = jnp.argmax(patch_scores, axis=1)
    max_feats = emb_flat.reshape(b, hh * ww, EMB_DIM)[bidx, max_patches]  # (B, C)
    score = patch_scores[bidx, max_patches]                               # s* in paper
    nn_index = locations[bidx, max_patches]
    nn_sample = memory_bank[nn_index]                                     # m* in paper
    d_nn = jnp.sqrt(jnp.maximum(jnp.sum(
        (nn_sample[:, None, :] - memory_bank[None, :, :]) ** 2, axis=-1), 0.0))
    k = min(num_neighbors, n_mem)
    _, support = jax.lax.top_k(-d_nn, k)                                  # N_b(m*)
    support_feats = memory_bank[support]                                  # (B, k, C)
    dist_sup = jnp.sqrt(jnp.maximum(
        jnp.sum((max_feats[:, None, :] - support_feats) ** 2, axis=-1), 0.0))
    weights = (1.0 - jax.nn.softmax(dist_sup, axis=1))[:, 0]
    pred_score = weights * score

    # ---- anomaly map: separable bilinear upsample + Gaussian blur -------------------
    bm = _gaussian_blur_matrix(CROP, BLUR_SIGMA)
    mh = bm @ _bilinear_matrix(CROP, hh)                            # (CROP, hh)
    mw = bm @ _bilinear_matrix(CROP, ww)                            # (CROP, ww)
    amap = pallas_separable_transform(
        patch_scores.reshape(b, hh, ww), jnp.asarray(mh), jnp.asarray(mw.T))
    amap = amap.reshape(b, 1, CROP, CROP)

    return {"anomaly_map": amap, "pred_score": pred_score}


# ----------------------------------------------------------------------------------
if __name__ == "__main__":
    key = jax.random.PRNGKey(0)
    key, kx, kp = jax.random.split(key, 3)
    x = jax.random.uniform(kx, (2, 3, 32, 32), jnp.float32)          # NCHW, like torch
    params, memory_bank = init_params(kp)

    out = patchcore_forward(x, params, memory_bank)
    out = jax.block_until_ready(out)

    assert out["anomaly_map"].shape == (2, 1, CROP, CROP)
    assert out["pred_score"].shape == (2,)
    assert bool(jnp.all(jnp.isfinite(out["anomaly_map"])))
    assert bool(jnp.all(jnp.isfinite(out["pred_score"])))
    print("KERNEL_OK")
</pallas_src>

<mosaic_0001>
module attributes {stable_mosaic.version = 11 : i64} {
  func.func @_sep2d_kernel(%arg0: i32, %arg1: memref<1x32x32xf32, #tpu.memory_space<vmem>>, %arg2: memref<14x32xf32, #tpu.memory_space<vmem>>, %arg3: memref<32x14xf32, #tpu.memory_space<vmem>>, %arg4: memref<1x14x14xf32, #tpu.memory_space<vmem>>) attributes {dimension_semantics = [#tpu.dimension_semantics<parallel>], iteration_bounds = array<i64: 6>, scalar_prefetch = 0 : i64, scratch_operands = 0 : i64, tpu.core_type = #tpu.core_type<tc>, window_params = [{transform_indices = @transform_0, window_bounds = array<i64: 1, 32, 32>}, {pipeline_mode = #tpu.pipeline_mode<synchronous>, transform_indices = @transform_1, window_bounds = array<i64: 14, 32>}, {pipeline_mode = #tpu.pipeline_mode<synchronous>, transform_indices = @transform_2, window_bounds = array<i64: 32, 14>}, {transform_indices = @transform_3, window_bounds = array<i64: 1, 14, 14>}]} {
    %c0 = arith.constant 0 : index
    %c0_0 = arith.constant 0 : index
    %0 = vector.load %arg2[%c0, %c0_0] : memref<14x32xf32, #tpu.memory_space<vmem>>, vector<14x32xf32>
    %c0_1 = arith.constant 0 : index
    %c0_2 = arith.constant 0 : index
    %c0_3 = arith.constant 0 : index
    %1 = vector.load %arg1[%c0_1, %c0_2, %c0_3] : memref<1x32x32xf32, #tpu.memory_space<vmem>>, vector<1x32x32xf32>
    %2 = vector.shape_cast %1 : vector<1x32x32xf32> to vector<32x32xf32>
    %cst = arith.constant dense<0.000000e+00> : vector<14x32xf32>
    %3 = tpu.matmul %0, %2, %cst {dimension_numbers = #tpu.dot_dimension_numbers<[1], [0], [0], [1], [0, 0, 1, 1], [], []>} : vector<14x32xf32>, vector<32x32xf32>, vector<14x32xf32> -> vector<14x32xf32>
    %c0_4 = arith.constant 0 : index
    %c0_5 = arith.constant 0 : index
    %4 = vector.load %arg3[%c0_4, %c0_5] : memref<32x14xf32, #tpu.memory_space<vmem>>, vector<32x14xf32>
    %cst_6 = arith.constant dense<0.000000e+00> : vector<14x14xf32>
    %5 = tpu.matmul %3, %4, %cst_6 {dimension_numbers = #tpu.dot_dimension_numbers<[1], [0], [0], [1], [0, 0, 1, 1], [], []>} : vector<14x32xf32>, vector<32x14xf32>, vector<14x14xf32> -> vector<14x14xf32>
    %c0_7 = arith.constant 0 : index
    %c0_8 = arith.constant 0 : index
    %c0_9 = arith.constant 0 : index
    %6 = vector.load %arg4[%c0_7, %c0_8, %c0_9] : memref<1x14x14xf32, #tpu.memory_space<vmem>>, vector<1x14x14xf32>
    %7 = vector.shape_cast %6 : vector<1x14x14xf32> to vector<14x14xf32>
    %8 = vector.shape_cast %5 : vector<14x14xf32> to vector<1x14x14xf32>
    tpu.vector_store %arg4[%c0_7, %c0_8, %c0_9], %8 {strides = array<i32>} : memref<1x14x14xf32, #tpu.memory_space<vmem>>, vector<1x14x14xf32>,
    return
  }
  func.func @transform_0(%arg0: i32) -> (i32, i32, i32) {
    %c0_i32 = arith.constant 0 : i32
    %c0_i32_0 = arith.constant 0 : i32
    %c0_i32_1 = arith.constant 0 : i32
    return %arg0, %c0_i32, %c0_i32_0 : i32, i32, i32
  }
  func.func @transform_1(%arg0: i32) -> (i32, i32) {
    %c0_i32 = arith.constant 0 : i32
    %c0_i32_0 = arith.constant 0 : i32
    %c0_i32_1 = arith.constant 0 : i32
    return %c0_i32, %c0_i32_0 : i32, i32
  }
  func.func @transform_2(%arg0: i32) -> (i32, i32) {
    %c0_i32 = arith.constant 0 : i32
    %c0_i32_0 = arith.constant 0 : i32
    %c0_i32_1 = arith.constant 0 : i32
    return %c0_i32, %c0_i32_0 : i32, i32
  }
  func.func @transform_3(%arg0: i32) -> (i32, i32, i32) {
    %c0_i32 = arith.constant 0 : i32
    %c0_i32_0 = arith.constant 0 : i32
    %c0_i32_1 = arith.constant 0 : i32
    return %arg0, %c0_i32, %c0_i32_0 : i32, i32, i32
  }
}

</mosaic_0001>

<bundles_post_ra>
// kernel: tpu_custom_call.1
= control target key start
LH: loop header
LB: loop body
LE: loop exit
PB: predicated region body
PF: predicated region fallthrough
CT: control target
= control target key end

     0   :  { %8 = vsyncpa [#allocation3], 0  ;;  %s880_s0 = inlined_call_operand.hbm [shape: f32[6,32,32], index: 0, kind: input, shape index: {}]   ;;  %s881_s1 = inlined_call_operand.vmem [shape: f32[14,32], index: 1, kind: input, shape index: {}]   ;;  %s882_s2 = inlined_call_operand.vmem [shape: f32[32,14], index: 2, kind: input, shape index: {}]   ;;  %s883_s3 = inlined_call_operand.hbm [shape: f32[6,14,14], index: 3, kind: output, shape index: {}]  }
   0x1   :  { %10 = vsyncpa [#allocation3 + $0x1], 0 }
   0x2   :  { %11 = vsyncpa [#allocation4], 0 }
   0x3   :  { %13 = vsyncpa [#allocation4 + $0x1], 0  ;;  %s697_s12 = smov 0   ;;  %s699_s13 = smov 0  }
   0x4   :  { %s701_s14 = smov 0   ;;  %s703_s15 = smov 0  }
   0x5 LB: > { %s718_s16 = sadd.s32 4294967295, %s669_s15   ;;  %s453_s17 = sadd.s32 4294967294, %s669_s15   ;;  %s669_s15 = sphi %s703_s15, %s895_s15   ;;  %s665_s14 = sphi %s701_s14, %s894_s14   ;;  %s661_s13 = sphi %s699_s13, %s893_s13   ;;  %s657_s12 = sphi %s697_s12, %s892_s12  }
   0x6   : > { %s722_s18 = sadd.s32 1, %s669_s15   ;;  %s26_s19 = sadd.s32 1, %s665_s14 }
   0x7   : > { %s23_s20 = ssub.s32 %s669_s15, %s722_s18  ;;  %p33_p0 = scmp.ne.s32.totalorder %s665_s14, %s661_s13 }
   0x8   : > { %p24_p1 = scmp.eq.s32.totalorder %s23_s20, 0  ;;  %p34_p2 = scmp.eq.s32.totalorder %s669_s15, 0 }
   0x9   : > { %p39_p3 = scmp.ne.s32.totalorder %s661_s13, %s657_s12  ;;  %p40_p4 = scmp.eq.s32.totalorder %s718_s16, 0 }
   0xa   : > { %s734_s21 = scalar_select %p24_p1, %s665_s14, %s26_s19  }
   0xb   : > { %p736_p5 = por %p34_p2, %p33_p0  ;;  %p740_p6 = por %p40_p4, %p39_p3 }
   0xc   : > { %p105_p7 = scmp.eq.s32.totalorder %s718_s16, 5  ;;  %p111_p8 = scmp.eq.s32.totalorder %s453_s17, 5 }
   0xd   : > { %p535_p9 = scmp.lt.s32.totalorder %s669_s15, 6  ;;  %s137_s26 = sand.u32 1, %s665_s14  }
   0xe   : > { %p746_p10 = por %p105_p7, %p33_p0  ;;  %p750_p11 = por %p111_p8, %p39_p3 }
   0xf   : > { %s471_s27 = sshll.u32 %s669_s15, 9  ;;  %s456_s28 = sshll.u32 %s137_s26, 5 }
  0x10   : > { %s887_s24 = scalar_select %p746_p10, 1, 0 }
  0x11   : > { %s888_s25 = scalar_select %p750_p11, 1, 0 }
  0x12   : > { %s759_s4 = scalar_lea.hbm %s880_s0, %s471_s27  ;;  %s141_s5 = scalar_lea.vmem [#allocation2], %s456_s28 }
  0x13   : > { %s148_s6 = sshll.u32 %s141_s5, 4  ;;  %p763_p12 = pnand %p535_p9, %p736_p5  ;;  %s767_s6 = int_to_ptr.vmem [resolvable:$true] %s148_s6 }
  0x14   : > { %s769_s8 = scalar_lea.sflag [#allocation3], %s137_s26  ;;  %s573_s9 = scalar_lea.hbm %s759_s4, 512 }
  0x15   : > { %p574_p13 = scmp.ne.s32.totalorder %s759_s4, %s573_s9  ;;  %p575_p0 = pneg %p763_p12 }
  0x16   : > { %s578_s17 = scalar_lea.hbm %s880_s0, 3072  ;;  %p579_p3 = scmp.lt.u32.totalorder %s759_s4, %s880_s0 }
  0x17   : > { %p576_p1 = pnand %p575_p0, %p574_p13  ;;  %p580_p4 = scmp.lt.u32.totalorder %s578_s17, %s573_s9 }
  0x18   : > { %p582_p7 = scmp.lt.u32.totalorder %s573_s9, %s759_s4 }
  0x19   : > { %p577_p2 = pneg %p576_p1  ;;  %p581_p5 = por %p580_p4, %p579_p3 }
  0x1b   : > { %p583_p8 = por %p582_p7, %p581_p5 }
  0x1d   : > { %p584_p9 = pnand %p583_p8, %p577_p2 }
  0x1f   : > { %587 = shalt.err (!%p584_p9)
}
  0x20   : > { %s588_s22 = scalar_lea.vmem %s767_s6, 512  ;;  %s671_s26 = smov [#allocation2]  }
  0x21   : > { %p589_p13 = scmp.ne.s32.totalorder %s767_s6, %s588_s22  ;;  %s593_s27 = sshll.u32 %s671_s26, 4  ;;  %s594_s27 = int_to_ptr.vmem [resolvable:$false] %s593_s27 }
  0x22   : > { %s595_s28 = scalar_lea.vmem %s594_s27, 1024  ;;  %p596_p10 = scmp.lt.s32.totalorder %s767_s6, %s594_s27 }
  0x23   : > { %p591_p1 = pnand %p589_p13, %p575_p0  ;;  %p597_p3 = scmp.lt.s32.totalorder %s595_s28, %s588_s22 }
  0x25   : > { %p592_p11 = pneg %p591_p1  ;;  %p598_p4 = por %p597_p3, %p596_p10 }
  0x27   : > { %p599_p5 = pnand %p598_p4, %p592_p11 }
  0x29   : > { %602 = shalt.err (!%p599_p5)
}
  0x2a   : > { %s672_s29 = smov 128   ;;  %s673_s30 = smov 8  }
  0x2b   : > { %530 = dma.hbm_to_vmem [thread:$0]  (!%p763_p12), %s759_s4, 512, %s767_s6, %s769_s8, %s672_s29, %s672_s29, %s673_s30  }
  0x2c   : > { %p459_p0 = scmp.ge.s32.totalorder %s669_s15, 1  ;;  %p156_p2 = scmp.lt.s32.totalorder %s669_s15, 7 }
  0x2e   : > { %p157_p7 = pnand %p459_p0, %p156_p2 }
  0x2f   : > { %s800_s5 = sand.u32 (!%p157_p7), 1, %s661_s13  }
  0x30   : > { %160 = sbr.rel (%p157_p7) target bundleno = 509 (0x1fd), region = 32  ;;  %s460_s9 = sshll.u32 (!%p157_p7), %s800_s5, 5 }
  0x31   : > { %s163_s10 = scalar_lea.sflag (!%p157_p7), [#allocation3], %s800_s5  ;;  %s166_s11 = scalar_lea.vmem (!%p157_p7), [#allocation2], %s460_s9 }
  0x37   : > { %648 = dma.done.wait (%p740_p6), %s163_s10, 512  }
  0x38   : > { %650 = vsyncadd (%p740_p6), %s163_s10, 4294966784  ;;  %vm195_vm0 = vcmask 261120   ;;  %v191_v0 = vld [vmem:[%s166_s11] sm:$0xff]  ;;  %v192_v1 = vld [vmem:[%s166_s11 + $0x8] sm:$0xff]  ;;  %s461_s29 = sshll.u32 %s800_s5, 4  ;;  %s472_s10 = sshll.u32 %s718_s16, 8 }
  0x39   : > { %v193_v2 = vld [vmem:[%s166_s11 + $0x10] sm:$0xff]  ;;  %v507_v3 = vpack.c.bf16 %v192_v1, %v191_v0  ;;  %v194_v4 = vld [vmem:[%s166_s11 + $0x18] sm:$0xff]  ;;  %v189_v5 = vld [vmem:[%s881_s1] sm:$0xff]  ;;  %s188_s30 = scalar_lea.vmem [#allocation5], %s461_s29  ;;  %vm364_vm1 = vcmask 111616   ;;  %vm362_vm2 = vcmask 113664   ;;  %s837_s6 = scalar_lea.hbm %s883_s3, %s472_s10 }
  0x3a   : > { %v511_v6 = vpack.c.bf16 %v194_v4, %v193_v2  ;;  %493 = vmatprep.mubr.msk.f32.mxu0 %vm195_vm0, %v189_v5  ;;  %v277_v7 = vld [vmem:[%s882_s2] sm:$0xff]  ;;  %v278_v8 = vld [vmem:[%s882_s2 + $0x8] sm:$0xff]  ;;  %v279_v9 = vld [vmem:[%s882_s2 + $0x10] sm:$0xff]  ;;  %s380_s9 = sshll.u32 %s188_s30, 4  ;;  %s367_s7 = scalar_lea.sflag [#allocation4], %s800_s5  ;;  %s832_s9 = int_to_ptr.vmem [resolvable:$true] %s380_s9 }
  0x3b   : > { %508 = vmatprep.subr.bf16.mxu0 %v507_v3  ;;  %v515_v10 = vpack.c.bf16 %v278_v8, %v277_v7  ;;  %v280_v11 = vld [vmem:[%s882_s2 + $0x18] sm:$0xff]  ;;  %v190_v13 = vld [vmem:[%s881_s1 + $0x8] sm:$0x3f]  ;;  %s603_s8 = scalar_lea.vmem %s832_s9, 256  ;;  %p890_p10 = scmp.ne.s32.totalorder %s887_s24, 0 }
  0x3c   : > { %510 = vmatpush3.bf16.msra.mxu0 %v507_v3  ;;  %v519_v12 = vpack.c.bf16 %v280_v11, %v279_v9  ;;  %p604_p6 = scmp.ne.s32.totalorder %s832_s9, %s603_s8  ;;  %s674_s16 = smov [#allocation5]  }
  0x3d   : > { %512 = vmatprep.subr.bf16.mxu0 %v511_v6  ;;  %516 = vmatprep.subr.bf16.mxu1 %v515_v10  ;;  %s607_s17 = sshll.u32 %s674_s16, 4  ;;  %s608_s17 = int_to_ptr.vmem [resolvable:$false] %s607_s17 }
  0x3e   : > { %518 = vmatpush3.bf16.msra.mxu1 %v515_v10  ;;  %p605_p11 = pnand %p604_p6, %p890_p10  ;;  %s609_s23 = scalar_lea.vmem %s608_s17, 512 }
  0x3f   : > { %520 = vmatprep.subr.bf16.mxu1 %v519_v12  ;;  %p610_p8 = scmp.lt.s32.totalorder %s832_s9, %s608_s17  ;;  %p611_p9 = scmp.lt.s32.totalorder %s609_s23, %s603_s8 }
  0x40   : > { %514 = vmatpush3.bf16.msra.mxu0 %v511_v6  ;;  %p606_p12 = pneg %p605_p11 }
  0x41   : > { %p612_p13 = por %p611_p9, %p610_p8 }
  0x42   : > { %522 = vmatpush3.bf16.msra.mxu1 %v519_v12 }
  0x43   : > { %494 = vmatmul.mubr.msk.f32.vlgmr.msra.gmra.mrb[0].mxu0 %vm195_vm0, %v190_v13  ;;  %p613_p1 = pnand %p612_p13, %p606_p12 }
 0x116   : > { %v495_v14 = vpop.f32.mrb[0].mxu0 }
 0x117   : > { %v268_v15 = vpop.f32.mrb[1].mxu0 }
 0x118   : > { %504 = vmatprep.mubr.msk.f32.mxu1 %vm195_vm0, %v268_v15 }
 0x119   : > { %505 = vmatmul.mubr.msk.f32.vlgmr.msra.gmra.mrb[0].mxu1 %vm195_vm0, %v495_v14 }
 0x1ec   : > { %v506_v16 = vpop.f32.mrb[0].mxu1 }
 0x1ed   : > { %365 = vst.msk [vmem:[%s188_s30 + $0x8] sm:$0x3f] %vm364_vm1, %v506_v16  ;;  %v353_v17 = vpop.f32.mrb[1].mxu1 }
 0x1ee   : > { %363 = vst.msk [vmem:[%s188_s30] sm:$0xff] %vm362_vm2, %v353_v17 }
 0x1ef   : > { %616 = shalt.err (!%p613_p1)
}
 0x1f0   : > { %s617_s19 = scalar_lea.hbm %s837_s6, 256  ;;  %s621_s26 = scalar_lea.hbm %s883_s3, 1536 }
 0x1f1   : > { %p618_p3 = scmp.ne.s32.totalorder %s837_s6, %s617_s19  ;;  %p622_p0 = scmp.lt.u32.totalorder %s837_s6, %s883_s3 }
 0x1f2   : > { %p623_p2 = scmp.lt.u32.totalorder %s621_s26, %s617_s19  ;;  %p625_p6 = scmp.lt.u32.totalorder %s617_s19, %s837_s6 }
 0x1f3   : > { %p619_p4 = pnand %p618_p3, %p890_p10 }
 0x1f4   : > { %p624_p7 = por %p623_p2, %p622_p0 }
 0x1f5   : > { %p620_p5 = pneg %p619_p4 }
 0x1f6   : > { %p626_p11 = por %p625_p6, %p624_p7 }
 0x1f8   : > { %p627_p12 = pnand %p626_p11, %p620_p5 }
 0x1fa   : > { %630 = shalt.err (!%p627_p12)
}
 0x1fb   : > { %s675_s29 = smov 128   ;;  %s676_s30 = smov 8  }
 0x1fc   : > { %525 = dma.vmem_to_hbm [thread:$0]  (%p890_p10), %s832_s9, 256, %s837_s6, %s367_s7, %s675_s29, %s675_s29, %s676_s30  }
 0x1fd PF: > { %p536_p8 = scmp.ge.s32.totalorder %s669_s15, 2  ;;  %s395_s10 = sand.u32 1, %s657_s12  }
 0x1fe   : > { %p891_p9 = scmp.ne.s32.totalorder %s888_s25, 0  ;;  %s396_s11 = scalar_lea.sflag [#allocation4], %s395_s10 }
 0x200   : > { %p532_p13 = pnand %p536_p8, %p891_p9 }
 0x202   : > { %652 = dma.done.wait (!%p532_p13), %s396_s11, 256  }
 0x203   : > { %654 = vsyncadd (!%p532_p13), %s396_s11, 4294967040  ;;  %p16_p1 = scmp.ge.s32.totalorder %s722_s18, 8   ;;  %s892_s12 = smov %s661_s13 }
 0x204   : > { %s893_s13 = smov %s665_s14  ;;  %s894_s14 = smov %s734_s21 }
 0x205   : > { %s895_s15 = smov %s722_s18  ;;  %18 = sbr.rel (!%p16_p1) target bundleno = 5 (0x5), region = 77 }
 0x20c   :  { %401 = vsyncpa [#allocation3], 1 }
 0x20d   :  { %403 = vsyncpa [#allocation3 + $0x1], 1 }
 0x20e   :  { %404 = vsyncpa [#allocation4], 1 }
 0x20f   :  { %406 = vsyncpa [#allocation4 + $0x1], 1 }

</bundles_post_ra>
